<compile_context>
chip_gen: v5e
topology: v5e:2x2
jax: 0.10.0
libtpu: 0.0.40
codegen_flags: <defaults>
</compile_context>

<pallas_src>
import functools

import jax
import jax.numpy as jnp
from jax import lax
from jax.experimental import pallas as pl
from jax.experimental.pallas import tpu as pltpu


# ----------------------------------------------------------------------------
# Kernel 1: fused linear (bf16 MXU matmul, f32 accumulation / f32 epilogue).
# Used once per forward for the folded (swin patch-embed @ fc) projection.
# ----------------------------------------------------------------------------
def _linear_kernel(x_ref, w_ref, b_ref, o_ref, *, relu):
    x = x_ref[...].astype(w_ref.dtype)               # f32 -> bf16 feed to MXU
    y = jnp.dot(x, w_ref[...], preferred_element_type=jnp.float32)
    y = y + b_ref[...]                               # f32 epilogue (v5e-safe)
    if relu:
        y = jnp.maximum(y, 0.0)
    o_ref[...] = y.astype(o_ref.dtype)


def _pick_tm(M, K, N, vmem_budget=24 * 1024 * 1024):
    """Largest 128/256-aligned row tile that divides M and whose
    double-buffered per-step footprint stays well under the scoped-VMEM
    default of every generation (v5e/v6e: 128 MiB, v7x: 64 MiB physical)."""
    for tm in (512, 256, 128, 64, 32, 16, 8):
        if M % tm:
            continue
        need = 2 * tm * (K + N) * 4 + 2 * K * N * 2   # x/out f32, weight bf16
        if need <= vmem_budget:
            return tm
    return M                                          # tiny / odd M: one block


def pallas_linear(x, w_bf16, b, relu=False):
    M, K = x.shape
    K2, N = w_bf16.shape
    assert K == K2
    tm = _pick_tm(M, K, N)
    # TODO(synk): add a K grid axis + f32 VMEM accumulator (pattern P1+P3) if
    # K or N ever grow beyond a few thousand; at K=384, N=512 the whole weight
    # stays resident in VMEM on every TPU generation.
    return pl.pallas_call(
        functools.partial(_linear_kernel, relu=relu),
        out_shape=jax.ShapeDtypeStruct((M, N), jnp.float32),
        grid_spec=pltpu.PrefetchScalarGridSpec(
            num_scalar_prefetch=0,
            grid=(M // tm,),
            in_specs=[
                pl.BlockSpec((tm, K), lambda i: (i, 0)),
                pl.BlockSpec((K, N), lambda i: (0, 0)),
                pl.BlockSpec((1, N), lambda i: (0, 0)),
            ],
            out_specs=pl.BlockSpec((tm, N), lambda i: (i, 0)),
        ),
        compiler_params=pltpu.CompilerParams(
            dimension_semantics=("parallel",)),
    )(x, w_bf16, b.reshape(1, N))


# ----------------------------------------------------------------------------
# Kernel 2: fused img_depended_att_full + mask assembly + sparsity reduction.
#   h          = relu(vid_feats @ W1 + b1)          (kept on-chip, no HBM trip)
#   logits     = h @ W2 + b2                         -> (B*N, N)
#   learn_att  = sigmoid(logits) per batch, diag-masked
#   video_att  = (1 - I) * learn_att ; learn_att = I + video_att
#   mask[:, -N:, -N:] = learn_att   (mask aliased in/out, only corner rewritten)
#   loss_sparsity = mean(|video_att|)  -> (1,1) SMEM scalar
# ----------------------------------------------------------------------------
def _att_mask_kernel(x_ref, w1_ref, b1_ref, w2_ref, b2_ref, mask_ref,
                     out_mask_ref, sp_ref, *, batch, n_vid, seq_len):
    # Linear(512,32) -> ReLU -> (Dropout = identity at inference) -> Linear(32,N)
    x = x_ref[...].astype(w1_ref.dtype)
    h = jnp.dot(x, w1_ref[...], preferred_element_type=jnp.float32) + b1_ref[...]
    h = jnp.maximum(h, 0.0)
    logits = (jnp.dot(h.astype(w2_ref.dtype), w2_ref[...],
                      preferred_element_type=jnp.float32) + b2_ref[...])  # (B*N, N)

    r = lax.broadcasted_iota(jnp.int32, (n_vid, n_vid), 0)
    c = lax.broadcasted_iota(jnp.int32, (n_vid, n_vid), 1)
    eye = (r == c).astype(jnp.float32)

    out_mask_ref[...] = mask_ref[...]           # pass text region through
    off = seq_len - n_vid
    sp = jnp.float32(0.0)
    for b in range(batch):                      # static unroll; batch is small
        sig = jax.nn.sigmoid(logits[b * n_vid:(b + 1) * n_vid, :])
        video_att = (1.0 - eye) * sig
        learn_att = eye + video_att
        out_mask_ref[b, off:, off:] = learn_att
        sp = sp + jnp.sum(jnp.abs(video_att))
    sp_ref[0, 0] = sp / jnp.float32(batch * n_vid * n_vid)


def pallas_att_mask(vid_feats_flat, w1_bf16, b1, w2_bf16, b2, attention_mask,
                    *, batch, n_vid):
    M, D = vid_feats_flat.shape
    _, Hd = w1_bf16.shape
    _, Nout = w2_bf16.shape
    Bm, L, L2 = attention_mask.shape
    assert Bm == batch and L == L2 and M == batch * n_vid and Nout == n_vid

    new_mask, sp = pl.pallas_call(
        functools.partial(_att_mask_kernel, batch=batch, n_vid=n_vid, seq_len=L),
        out_shape=(jax.ShapeDtypeStruct((batch, L, L), jnp.float32),
                   jax.ShapeDtypeStruct((1, 1), jnp.float32)),
        grid_spec=pltpu.PrefetchScalarGridSpec(
            num_scalar_prefetch=0,
            grid=(1,),
            in_specs=[
                pl.BlockSpec((M, D), lambda i: (0, 0)),
                pl.BlockSpec((D, Hd), lambda i: (0, 0)),
                pl.BlockSpec((1, Hd), lambda i: (0, 0)),
                pl.BlockSpec((Hd, Nout), lambda i: (0, 0)),
                pl.BlockSpec((1, Nout), lambda i: (0, 0)),
                pl.BlockSpec((batch, L, L), lambda i: (0, 0, 0)),
            ],
            out_specs=(
                pl.BlockSpec((batch, L, L), lambda i: (0, 0, 0)),
                pl.BlockSpec(memory_space=pltpu.MemorySpace.SMEM),
            ),
        ),
        input_output_aliases={5: 0},            # attention_mask -> new_mask
        compiler_params=pltpu.CompilerParams(
            dimension_semantics=("arbitrary",)),
    )(vid_feats_flat, w1_bf16, b1.reshape(1, Hd), w2_bf16, b2.reshape(1, Nout),
      attention_mask)

    return new_mask, sp[0, 0]


# ----------------------------------------------------------------------------
# VideoTransformer forward-pass wrapper (inference semantics: Dropout = id).
# ----------------------------------------------------------------------------
class VideoTransformerPallas:
    def __init__(self, key, *, in_ch=3, patch=(2, 8, 8), latent_feat_size=32,
                 img_feature_dim=512, max_img_seq_length=8,
                 learn_mask_enabled=True, use_grid_feat=True):
        self.patch = patch
        self.latent_feat_size = latent_feat_size
        self.img_feature_dim = img_feature_dim
        self.max_img_seq_length = max_img_seq_length
        self.learn_mask_enabled = learn_mask_enabled
        self.use_grid_feat = use_grid_feat

        pt, ph, pw = patch
        kp = in_ch * pt * ph * pw
        ks = jax.random.split(key, 8)
        s = 0.02
        # swin backbone stand-in (patch-embed projection)
        self.patch_w = s * jax.random.normal(ks[0], (kp, latent_feat_size), jnp.float32)
        self.patch_b = s * jax.random.normal(ks[1], (latent_feat_size,), jnp.float32)
        # self.fc = Linear(latent_feat_size, img_feature_dim)
        self.fc_w = s * jax.random.normal(ks[2], (latent_feat_size, img_feature_dim), jnp.float32)
        self.fc_b = s * jax.random.normal(ks[3], (img_feature_dim,), jnp.float32)
        # Fold patch-embed and fc into one projection (both linear, no
        # nonlinearity between them): W = patch_w @ fc_w, b = patch_b @ fc_w + fc_b.
        self.fold_w = (self.patch_w @ self.fc_w).astype(jnp.bfloat16)
        self.fold_b = (self.patch_b @ self.fc_w + self.fc_b).astype(jnp.float32)
        # img_depended_att_full = Linear(512, 32) -> ReLU -> Dropout -> Linear(32, N)
        self.att1_w = s * jax.random.normal(ks[4], (img_feature_dim, 32), jnp.float32)
        self.att1_b = s * jax.random.normal(ks[5], (32,), jnp.float32)
        self.att2_w = s * jax.random.normal(ks[6], (32, max_img_seq_length), jnp.float32)
        self.att2_b = s * jax.random.normal(ks[7], (max_img_seq_length,), jnp.float32)
        self.att1_w_bf16 = self.att1_w.astype(jnp.bfloat16)
        self.att2_w_bf16 = self.att2_w.astype(jnp.bfloat16)

    def forward(self, *, img_feats, attention_mask):
        B, S, C, H, W = img_feats.shape
        images = jnp.transpose(img_feats, (0, 2, 1, 3, 4))  # (B, C, S, H, W)

        # --- swin backbone ---------------------------------------------------
        # TODO(synk): the full Video Swin Transformer backbone is an external,
        # injected submodule; replaced here by a single patch-embed projection
        # that is algebraically folded with self.fc into one matmul.
        pt, ph, pw = self.patch
        T, Hh, Ww = S // pt, H // ph, W // pw
        x = images.reshape(B, C, T, pt, Hh, ph, Ww, pw)
        x = jnp.transpose(x, (0, 2, 4, 6, 1, 3, 5, 7))        # (B,T,H',W',C,pt,ph,pw)
        patches = x.reshape(B * T * Hh * Ww, C * pt * ph * pw).astype(jnp.float32)
        n_vid = T * Hh * Ww
        # use_grid_feat permute(0,2,3,4,1) is realized by the (T,H',W',latent)
        # token ordering above; view(B, -1, latent) is the reshape below.

        # --- swin patch-embed + self.fc: one fused Pallas matmul --------------
        vid_feats_flat = pallas_linear(patches, self.fold_w, self.fold_b)   # (B*N, 512)
        vid_feats = vid_feats_flat.reshape(B, n_vid, self.img_feature_dim)

        loss_sparsity = None
        if self.learn_mask_enabled:
            assert n_vid == self.max_img_seq_length
            attention_mask, loss_sparsity = pallas_att_mask(
                vid_feats_flat, self.att1_w_bf16, self.att1_b,
                self.att2_w_bf16, self.att2_b,
                attention_mask.astype(jnp.float32),
                batch=B, n_vid=n_vid)

        # --- trans_encoder ----------------------------------------------------
        # TODO(synk): self.trans_encoder (BERT caption encoder) is an external,
        # injected submodule; its forward is not part of this module's own math.
        outputs = (vid_feats, attention_mask)
        if self.learn_mask_enabled:
            outputs = outputs + (loss_sparsity,)
        return outputs


if __name__ == "__main__":
    key = jax.random.PRNGKey(0)
    k_param, k_img = jax.random.split(key)

    # small shapes: B=2 clips, S=4 frames, C=3, H=W=16
    # patch (2,8,8) -> T'=2, H'=W'=2 -> n_vid = 8 video tokens
    # max_img_seq_length = 8, text tokens = 8 -> attention mask L = 16
    B, S, C, H, W = 2, 4, 3, 16, 16
    n_vid, txt_len = 8, 8
    L = txt_len + n_vid

    model = VideoTransformerPallas(
        k_param, in_ch=C, patch=(2, 8, 8), latent_feat_size=32,
        img_feature_dim=512, max_img_seq_length=n_vid,
        learn_mask_enabled=True, use_grid_feat=True)

    img_feats = jax.random.normal(k_img, (B, S, C, H, W), jnp.float32)
    attention_mask = jnp.ones((B, L, L), jnp.float32)

    outputs = model.forward(img_feats=img_feats, attention_mask=attention_mask)
    jax.block_until_ready(outputs)

    vid_feats, new_mask, loss_sparsity = outputs
    assert vid_feats.shape == (B, n_vid, 512)
    assert new_mask.shape == (B, L, L)
    assert loss_sparsity.shape == ()
    print("KERNEL_OK")
</pallas_src>

<mosaic_0001>
module attributes {stable_mosaic.version = 11 : i64} {
  func.func @_linear_kernel(%arg0: i32, %arg1: memref<16x384xf32, #tpu.memory_space<vmem>>, %arg2: memref<384x512xbf16, #tpu.memory_space<vmem>>, %arg3: memref<1x512xf32, #tpu.memory_space<vmem>>, %arg4: memref<16x512xf32, #tpu.memory_space<vmem>>) attributes {dimension_semantics = [#tpu.dimension_semantics<parallel>], iteration_bounds = array<i64: 1>, scalar_prefetch = 0 : i64, scratch_operands = 0 : i64, tpu.core_type = #tpu.core_type<tc>, window_params = [{transform_indices = @transform_0, window_bounds = array<i64: 16, 384>}, {pipeline_mode = #tpu.pipeline_mode<synchronous>, transform_indices = @transform_1, window_bounds = array<i64: 384, 512>}, {pipeline_mode = #tpu.pipeline_mode<synchronous>, transform_indices = @transform_2, window_bounds = array<i64: 1, 512>}, {transform_indices = @transform_3, window_bounds = array<i64: 16, 512>}]} {
    %c0 = arith.constant 0 : index
    %c0_0 = arith.constant 0 : index
    %0 = vector.load %arg1[%c0, %c0_0] : memref<16x384xf32, #tpu.memory_space<vmem>>, vector<16x384xf32>
    %1 = arith.truncf %0 : vector<16x384xf32> to vector<16x384xbf16>
    %c0_1 = arith.constant 0 : index
    %c0_2 = arith.constant 0 : index
    %2 = vector.load %arg2[%c0_1, %c0_2] : memref<384x512xbf16, #tpu.memory_space<vmem>>, vector<384x512xbf16>
    %cst = arith.constant dense<0.000000e+00> : vector<16x512xf32>
    %3 = tpu.matmul %1, %2, %cst {dimension_numbers = #tpu.dot_dimension_numbers<[1], [0], [0], [1], [0, 0, 1, 1], [], []>} : vector<16x384xbf16>, vector<384x512xbf16>, vector<16x512xf32> -> vector<16x512xf32>
    %c0_3 = arith.constant 0 : index
    %c0_4 = arith.constant 0 : index
    %4 = vector.load %arg3[%c0_3, %c0_4] : memref<1x512xf32, #tpu.memory_space<vmem>>, vector<1x512xf32>
    %5 = vector.broadcast %4 : vector<1x512xf32> to vector<16x512xf32>
    %6 = arith.addf %3, %5 : vector<16x512xf32>
    %c0_5 = arith.constant 0 : index
    %c0_6 = arith.constant 0 : index
    %7 = vector.load %arg4[%c0_5, %c0_6] : memref<16x512xf32, #tpu.memory_space<vmem>>, vector<16x512xf32>
    tpu.vector_store %arg4[%c0_5, %c0_6], %6 {strides = array<i32>} : memref<16x512xf32, #tpu.memory_space<vmem>>, vector<16x512xf32>,
    return
  }
  func.func @transform_0(%arg0: i32) -> (i32, i32) {
    %c0_i32 = arith.constant 0 : i32
    %c0_i32_0 = arith.constant 0 : i32
    return %arg0, %c0_i32 : i32, i32
  }
  func.func @transform_1(%arg0: i32) -> (i32, i32) {
    %c0_i32 = arith.constant 0 : i32
    %c0_i32_0 = arith.constant 0 : i32
    %c0_i32_1 = arith.constant 0 : i32
    return %c0_i32, %c0_i32_0 : i32, i32
  }
  func.func @transform_2(%arg0: i32) -> (i32, i32) {
    %c0_i32 = arith.constant 0 : i32
    %c0_i32_0 = arith.constant 0 : i32
    %c0_i32_1 = arith.constant 0 : i32
    return %c0_i32, %c0_i32_0 : i32, i32
  }
  func.func @transform_3(%arg0: i32) -> (i32, i32) {
    %c0_i32 = arith.constant 0 : i32
    %c0_i32_0 = arith.constant 0 : i32
    return %arg0, %c0_i32 : i32, i32
  }
}

</mosaic_0001>

<bundles_post_ra>
// kernel: tpu_custom_call.1
= control target key start
LH: loop header
LB: loop body
LE: loop exit
PB: predicated region body
PF: predicated region fallthrough
CT: control target
= control target key end

     0   :  { %8 = vsyncpa [#allocation3], 0  ;;  %s1503_s0 = inlined_call_operand.hbm [shape: f32[16,384], index: 0, kind: input, shape index: {}]   ;;  %s1504_s1 = inlined_call_operand.hbm [shape: bf16[384,512], index: 1, kind: input, shape index: {}]   ;;  %s1505_s2 = inlined_call_operand.hbm [shape: f32[1,512], index: 2, kind: input, shape index: {}]   ;;  %s1506_s3 = inlined_call_operand.hbm [shape: f32[16,512], index: 3, kind: output, shape index: {}]  }
   0x1   :  { %9 = vsyncpa [#allocation6], 0  ;;  %s28_s14 = sshll.u32 %s1504_s1, 4  ;;  %s29_s14 = int_to_ptr.hbm [resolvable:$true] %s28_s14 }
   0x2   :  { %10 = vsyncpa [#allocation4], 0  ;;  %s1443_s15 = smov [#allocation5]   ;;  %s15_s19 = sshll.u32 %s1503_s0, 4  ;;  %s16_s19 = int_to_ptr.hbm [resolvable:$true] %s15_s19 }
   0x3   :  { %s30_s16 = sshll.u32 %s1443_s15, 4  ;;  %s1444_s20 = smov 256   ;;  %s31_s16 = int_to_ptr.vmem [resolvable:$true] %s30_s16 }
   0x4   :  { %s1445_s21 = smov 16   ;;  %s1446_s22 = smov [#allocation2]  }
   0x5   :  { %36 = dma.hbm_to_vmem [thread:$0]  %s29_s14, 12288, %s31_s16, [#allocation6], %s1444_s20, %s1444_s20, %s1445_s21  }
   0x6   :  { %s17_s23 = sshll.u32 %s1446_s22, 4  ;;  %s1447_s24 = smov 384   ;;  %s18_s23 = int_to_ptr.vmem [resolvable:$true] %s17_s23 }
   0x7   :  { %s1448_s25 = smov 24   ;;  %s42_s27 = sshll.u32 %s1505_s2, 4  ;;  %s43_s27 = int_to_ptr.hbm [resolvable:$true] %s42_s27 }
   0x8   :  { %23 = dma.hbm_to_vmem [thread:$0]  %s16_s19, 768, %s18_s23, [#allocation3], %s1447_s24, %s1447_s24, %s1448_s25  }
   0x9   :  { %s1449_s28 = smov [#allocation7]  }
   0xa   :  { %s44_s29 = sshll.u32 %s1449_s28, 4  ;;  %s45_s29 = int_to_ptr.vmem [resolvable:$true] %s44_s29 }
   0xb   :  { %47 = dma.hbm_to_vmem [thread:$0]  %s43_s27, 64, %s45_s29, [#allocation6]  }
   0xc   :  { %1437 = dma.done.wait [#allocation3], 768  }
   0xd   :  { %1438 = vsyncadd [#allocation3], 4294966528 }
   0xe   :  { %1439 = dma.done.wait [#allocation6], 12352  }
   0xf   :  { %1440 = vsyncadd [#allocation6], 4294954944  ;;  %v965_v0 = vld [vmem:[#allocation5 + $0xe0] sm:$0xf]  ;;  %v1265_v1 = vld [vmem:[#allocation5 + $0xec] sm:$0xf0] }
  0x10   :  { %v1093_v2 = vld [vmem:[#allocation5 + $0x1e0] sm:$0xf]  ;;  %v966_v3 = vor.u32 %v1265_v1, %v965_v0  ;;  %v1297_v4 = vld [vmem:[#allocation5 + $0x1ec] sm:$0xf0]  ;;  %v1263_v9 = vld [vmem:[#allocation5 + $0xe4] sm:$0xf] }
  0x11   :  { %v1221_v5 = vld [vmem:[#allocation5 + $0x2e0] sm:$0xf]  ;;  %v1329_v6 = vld [vmem:[#allocation5 + $0x2ec] sm:$0xf0]  ;;  %v1094_v7 = vor.u32 %v1297_v4, %v1093_v2  ;;  %v967_v10 = vld [vmem:[#allocation5 + $0xf0] sm:$0xf0] }
  0x12   :  { %v1222_v8 = vor.u32 %v1329_v6, %v1221_v5  ;;  %v949_v11 = vld [vmem:[#allocation5 + $0xc0] sm:$0xf]  ;;  %655 = vmatpush.bf16.msra.mxu0 %v966_v3  ;;  %v970_v12 = vor.u32 %v1263_v9, %v967_v10  ;;  %v1261_v13 = vld [vmem:[#allocation5 + $0xcc] sm:$0xf0]  ;;  %v1259_v20 = vld [vmem:[#allocation5 + $0xc4] sm:$0xf] }
  0x13   :  { %v1077_v14 = vld [vmem:[#allocation5 + $0x1c0] sm:$0xf]  ;;  %v1293_v15 = vld [vmem:[#allocation5 + $0x1cc] sm:$0xf0]  ;;  %669 = vmatpush.bf16.msra.mxu1 %v1094_v7  ;;  %v950_v16 = vor.u32 %v1261_v13, %v949_v11  ;;  %v951_v22 = vld [vmem:[#allocation5 + $0xd0] sm:$0xf0] }
  0x14   :  { %683 = vmatpush.bf16.msra.mxu2 %v1222_v8  ;;  %v1078_v17 = vor.u32 %v1293_v15, %v1077_v14  ;;  %v1205_v18 = vld [vmem:[#allocation5 + $0x2c0] sm:$0xf]  ;;  %v1325_v19 = vld [vmem:[#allocation5 + $0x2cc] sm:$0xf0]  ;;  %697 = vmatpush.bf16.msra.mxu3 %v970_v12  ;;  %v954_v25 = vor.u32 %v1259_v20, %v951_v22  ;;  %v1255_v31 = vld [vmem:[#allocation5 + $0xa4] sm:$0xf] }
  0x15   :  { %v1206_v21 = vor.u32 %v1325_v19, %v1205_v18  ;;  %v933_v23 = vld [vmem:[#allocation5 + $0xa0] sm:$0xf]  ;;  %v1257_v24 = vld [vmem:[#allocation5 + $0xac] sm:$0xf0]  ;;  %v935_v32 = vld [vmem:[#allocation5 + $0xb0] sm:$0xf0] }
  0x16   :  { %v1061_v26 = vld [vmem:[#allocation5 + $0x1a0] sm:$0xf]  ;;  %v1289_v27 = vld [vmem:[#allocation5 + $0x1ac] sm:$0xf0]  ;;  %656 = vmatpush.bf16.msra.mxu0 %v950_v16  ;;  %v934_v29 = vor.u32 %v1257_v24, %v933_v23  ;;  %v938_v38 = vor.u32 %v1255_v31, %v935_v32  ;;  %v1251_v42 = vld [vmem:[#allocation5 + $0x84] sm:$0xf] }
  0x17   :  { %v1189_v28 = vld [vmem:[#allocation5 + $0x2a0] sm:$0xf]  ;;  %v1321_v30 = vld [vmem:[#allocation5 + $0x2ac] sm:$0xf0]  ;;  %670 = vmatpush.bf16.msra.mxu1 %v1078_v17  ;;  %v1062_v33 = vor.u32 %v1289_v27, %v1061_v26  ;;  %v919_v43 = vld [vmem:[#allocation5 + $0x90] sm:$0xf0] }
  0x18   :  { %684 = vmatpush.bf16.msra.mxu2 %v1206_v21  ;;  %v1190_v34 = vor.u32 %v1321_v30, %v1189_v28  ;;  %v917_v35 = vld [vmem:[#allocation5 + $0x80] sm:$0xf]  ;;  %v1253_v36 = vld [vmem:[#allocation5 + $0x8c] sm:$0xf0]  ;;  %698 = vmatpush.bf16.msra.mxu3 %v954_v25  ;;  %v922_v50 = vor.u32 %v1251_v42, %v919_v43  ;;  %v1247_v54 = vld [vmem:[#allocation5 + $0x64] sm:$0xf] }
  0x19   :  { %v1045_v37 = vld [vmem:[#allocation5 + $0x180] sm:$0xf]  ;;  %v1285_v39 = vld [vmem:[#allocation5 + $0x18c] sm:$0xf0]  ;;  %v918_v44 = vor.u32 %v1253_v36, %v917_v35  ;;  %v903_v55 = vld [vmem:[#allocation5 + $0x70] sm:$0xf0] }
  0x1a   :  { %v1173_v40 = vld [vmem:[#allocation5 + $0x280] sm:$0xf]  ;;  %v1317_v41 = vld [vmem:[#allocation5 + $0x28c] sm:$0xf0]  ;;  %657 = vmatpush.bf16.msra.mxu0 %v934_v29  ;;  %v1046_v45 = vor.u32 %v1285_v39, %v1045_v37  ;;  %v906_v62 = vor.u32 %v1247_v54, %v903_v55  ;;  %v1243_v2 = vld [vmem:[#allocation5 + $0x44] sm:$0xf] }
  0x1b   :  { %671 = vmatpush.bf16.msra.mxu1 %v1062_v33  ;;  %v1174_v46 = vor.u32 %v1317_v41, %v1173_v40  ;;  %v901_v47 = vld [vmem:[#allocation5 + $0x60] sm:$0xf]  ;;  %v1249_v48 = vld [vmem:[#allocation5 + $0x6c] sm:$0xf0]  ;;  %v887_v3 = vld [vmem:[#allocation5 + $0x50] sm:$0xf0] }
  0x1c   :  { %685 = vmatpush.bf16.msra.mxu2 %v1190_v34  ;;  %v1029_v49 = vld [vmem:[#allocation5 + $0x160] sm:$0xf]  ;;  %699 = vmatpush.bf16.msra.mxu3 %v938_v38  ;;  %v1281_v51 = vld [vmem:[#allocation5 + $0x16c] sm:$0xf0]  ;;  %v902_v56 = vor.u32 %v1249_v48, %v901_v47  ;;  %v890_v10 = vor.u32 %v1243_v2, %v887_v3  ;;  %v1239_v14 = vld [vmem:[#allocation5 + $0x24] sm:$0xf] }
  0x1d   :  { %v1157_v52 = vld [vmem:[#allocation5 + $0x260] sm:$0xf]  ;;  %v1313_v53 = vld [vmem:[#allocation5 + $0x26c] sm:$0xf0]  ;;  %v1030_v57 = vor.u32 %v1281_v51, %v1029_v49  ;;  %v871_v15 = vld [vmem:[#allocation5 + $0x30] sm:$0xf0] }
  0x1e   :  { %658 = vmatpush.bf16.msra.mxu0 %v918_v44  ;;  %v1158_v58 = vor.u32 %v1313_v53, %v1157_v52  ;;  %v885_v59 = vld [vmem:[#allocation5 + $0x40] sm:$0xf]  ;;  %v1245_v60 = vld [vmem:[#allocation5 + $0x4c] sm:$0xf0]  ;;  %v874_v24 = vor.u32 %v1239_v14, %v871_v15  ;;  %v1235_v26 = vld [vmem:[#allocation5 + $0x4] sm:$0xf] }
  0x1f   :  { %672 = vmatpush.bf16.msra.mxu1 %v1046_v45  ;;  %v1013_v61 = vld [vmem:[#allocation5 + $0x140] sm:$0xf]  ;;  %v1277_v63 = vld [vmem:[#allocation5 + $0x14c] sm:$0xf0]  ;;  %v886_v4 = vor.u32 %v1245_v60, %v885_v59  ;;  %v855_v27 = vld [vmem:[#allocation5 + $0x10] sm:$0xf0] }
  0x20   :  { %686 = vmatpush.bf16.msra.mxu2 %v1174_v46  ;;  %700 = vmatpush.bf16.msra.mxu3 %v922_v50  ;;  %v1141_v0 = vld [vmem:[#allocation5 + $0x240] sm:$0xf]  ;;  %v1309_v1 = vld [vmem:[#allocation5 + $0x24c] sm:$0xf0]  ;;  %v1014_v5 = vor.u32 %v1277_v63, %v1013_v61  ;;  %v1295_v28 = vld [vmem:[#allocation5 + $0x1e4] sm:$0xf]  ;;  %v858_v39 = vor.u32 %v1235_v26, %v855_v27 }
  0x21   :  { %v1142_v6 = vor.u32 %v1309_v1, %v1141_v0  ;;  %v869_v7 = vld [vmem:[#allocation5 + $0x20] sm:$0xf]  ;;  %v1241_v8 = vld [vmem:[#allocation5 + $0x2c] sm:$0xf0]  ;;  %v1095_v29 = vld [vmem:[#allocation5 + $0x1f0] sm:$0xf0] }
  0x22   :  { %659 = vmatpush.bf16.msra.mxu0 %v902_v56  ;;  %v997_v9 = vld [vmem:[#allocation5 + $0x120] sm:$0xf]  ;;  %v1273_v11 = vld [vmem:[#allocation5 + $0x12c] sm:$0xf0]  ;;  %v870_v16 = vor.u32 %v1241_v8, %v869_v7  ;;  %v1327_v30 = vld [vmem:[#allocation5 + $0x2e4] sm:$0xf]  ;;  %v1098_v40 = vor.u32 %v1295_v28, %v1095_v29 }
  0x23   :  { %673 = vmatpush.bf16.msra.mxu1 %v1030_v57  ;;  %v1125_v12 = vld [vmem:[#allocation5 + $0x220] sm:$0xf]  ;;  %v1305_v13 = vld [vmem:[#allocation5 + $0x22c] sm:$0xf0]  ;;  %v998_v19 = vor.u32 %v1273_v11, %v997_v9  ;;  %v1223_v32 = vld [vmem:[#allocation5 + $0x2f0] sm:$0xf0] }
  0x24   :  { %687 = vmatpush.bf16.msra.mxu2 %v1158_v58  ;;  %701 = vmatpush.bf16.msra.mxu3 %v906_v62  ;;  %v853_v17 = vld [vmem:[#allocation5] sm:$0xf]  ;;  %v1237_v18 = vld [vmem:[#allocation5 + $0xc] sm:$0xf0]  ;;  %v1126_v20 = vor.u32 %v1305_v13, %v1125_v12  ;;  %v973_v33 = vld [vmem:[#allocation5 + $0xe8] sm:$0xf]  ;;  %v1226_v42 = vor.u32 %v1327_v30, %v1223_v32 }
  0x25   :  { %v981_v21 = vld [vmem:[#allocation5 + $0x100] sm:$0xf]  ;;  %v1269_v22 = vld [vmem:[#allocation5 + $0x10c] sm:$0xf0]  ;;  %v854_v31 = vor.u32 %v1237_v18, %v853_v17  ;;  %v1266_v34 = vld [vmem:[#allocation5 + $0xf4] sm:$0xf0] }
  0x26   :  { %660 = vmatpush.bf16.msra.mxu0 %v886_v4  ;;  %v1109_v23 = vld [vmem:[#allocation5 + $0x200] sm:$0xf]  ;;  %v1301_v25 = vld [vmem:[#allocation5 + $0x20c] sm:$0xf0]  ;;  %v982_v35 = vor.u32 %v1269_v22, %v981_v21  ;;  %v1101_v37 = vld [vmem:[#allocation5 + $0x1e8] sm:$0xf]  ;;  %v974_v43 = vor.u32 %v1266_v34, %v973_v33 }
  0x27   :  { %674 = vmatpush.bf16.msra.mxu1 %v1014_v5  ;;  %v1110_v36 = vor.u32 %v1301_v25, %v1109_v23  ;;  %v1298_v38 = vld [vmem:[#allocation5 + $0x1f4] sm:$0xf0]  ;;  %v1291_v41 = vld [vmem:[#allocation5 + $0x1c4] sm:$0xf]  ;;  %v1079_v44 = vld [vmem:[#allocation5 + $0x1d0] sm:$0xf0] }
  0x28   :  { %688 = vmatpush.bf16.msra.mxu2 %v1142_v6  ;;  %702 = vmatpush.bf16.msra.mxu3 %v890_v10  ;;  %v1323_v45 = vld [vmem:[#allocation5 + $0x2c4] sm:$0xf]  ;;  %v1207_v46 = vld [vmem:[#allocation5 + $0x2d0] sm:$0xf0]  ;;  %v1102_v47 = vor.u32 %v1298_v38, %v1101_v37  ;;  %v957_v48 = vld [vmem:[#allocation5 + $0xc8] sm:$0xf]  ;;  %v1082_v54 = vor.u32 %v1291_v41, %v1079_v44 }
  0x29   :  { %v1262_v49 = vld [vmem:[#allocation5 + $0xd4] sm:$0xf0]  ;;  %v1085_v50 = vld [vmem:[#allocation5 + $0x1c8] sm:$0xf]  ;;  %v60_v52 = vld [vmem:[#allocation2] sm:$0xff]  ;;  %v1210_v59 = vor.u32 %v1323_v45, %v1207_v46  ;;  %s1450_s0 = smov [#allocation8]  }
  0x2a   :  { %661 = vmatpush.bf16.msra.mxu0 %v870_v16  ;;  %v1294_v51 = vld [vmem:[#allocation5 + $0x1d4] sm:$0xf0]  ;;  %v63_v53 = vld [vmem:[#allocation2 + $0x18] sm:$0xff]  ;;  %v1287_v55 = vld [vmem:[#allocation5 + $0x1a4] sm:$0xf]  ;;  %v958_v60 = vor.u32 %v1262_v49, %v957_v48  ;;  %s835_s2 = sshll.u32 %s1450_s0, 4  ;;  %s836_s2 = int_to_ptr.vmem [resolvable:$true] %s835_s2 }
  0x2b   :  { %675 = vmatpush.bf16.msra.mxu1 %v998_v19  ;;  %v1063_v56 = vld [vmem:[#allocation5 + $0x1b0] sm:$0xf0]  ;;  %v1319_v57 = vld [vmem:[#allocation5 + $0x2a4] sm:$0xf]  ;;  %v1482_v58 = vpack.c.bf16 %v63_v53, %v60_v52  ;;  %v941_v62 = vld [vmem:[#allocation5 + $0xa8] sm:$0xf]  ;;  %v1086_v0 = vor.u32 %v1294_v51, %v1085_v50 }
  0x2c   :  { %689 = vmatpush.bf16.msra.mxu2 %v1126_v20  ;;  %703 = vmatpush.bf16.msra.mxu3 %v874_v24  ;;  %v1191_v61 = vld [vmem:[#allocation5 + $0x2b0] sm:$0xf0]  ;;  %v1258_v63 = vld [vmem:[#allocation5 + $0xb4] sm:$0xf0]  ;;  %v1069_v1 = vld [vmem:[#allocation5 + $0x1a8] sm:$0xf]  ;;  %v1066_v8 = vor.u32 %v1287_v55, %v1063_v56 }
  0x2d   :  { %v61_v2 = vld [vmem:[#allocation2 + $0x8] sm:$0xff]  ;;  %v64_v3 = vld [vmem:[#allocation2 + $0x20] sm:$0xff]  ;;  %v62_v6 = vld [vmem:[#allocation2 + $0x10] sm:$0xff]  ;;  %v1194_v10 = vor.u32 %v1319_v57, %v1191_v61  ;;  %v942_v11 = vor.u32 %v1258_v63, %v941_v62  ;;  %s837_s5 = sshll.u32 %s1506_s3, 4  ;;  %s1451_s6 = smov 512   ;;  %s838_s5 = int_to_ptr.hbm [resolvable:$true] %s837_s5 }
  0x2e   :  { %662 = vmatpush.bf16.msra.mxu0 %v854_v31  ;;  %v1290_v4 = vld [vmem:[#allocation5 + $0x1b4] sm:$0xf0]  ;;  %v1485_v5 = vpack.c.bf16 %v64_v3, %v61_v2  ;;  %v1283_v12 = vld [vmem:[#allocation5 + $0x184] sm:$0xf]  ;;  %v1047_v13 = vld [vmem:[#allocation5 + $0x190] sm:$0xf0] }
  0x2f   :  { %676 = vmatpush.bf16.msra.mxu1 %v982_v35  ;;  %v65_v7 = vld [vmem:[#allocation2 + $0x28] sm:$0xff]  ;;  %v1315_v14 = vld [vmem:[#allocation5 + $0x284] sm:$0xf]  ;;  %v1070_v15 = vor.u32 %v1290_v4, %v1069_v1  ;;  %v1175_v16 = vld [vmem:[#allocation5 + $0x290] sm:$0xf0]  ;;  %v1050_v21 = vor.u32 %v1283_v12, %v1047_v13  ;;  %s1452_s7 = smov 32  }
  0x30   :  { %690 = vmatpush.bf16.msra.mxu2 %v1110_v36  ;;  %704 = vmatpush.bf16.msra.mxu3 %v858_v39  ;;  %v1488_v9 = vpack.c.bf16 %v65_v7, %v62_v6  ;;  %v925_v17 = vld [vmem:[#allocation5 + $0x88] sm:$0xf]  ;;  %v1254_v18 = vld [vmem:[#allocation5 + $0x94] sm:$0xf0]  ;;  %v1178_v22 = vor.u32 %v1315_v14, %v1175_v16  ;;  %v1279_v24 = vld [vmem:[#allocation5 + $0x164] sm:$0xf] }
  0x31   :  { %663 = vmatmul.bf16.vlgmr.msra.gmra.mxu0 %v1482_v58  ;;  %v1053_v19 = vld [vmem:[#allocation5 + $0x188] sm:$0xf]  ;;  %v1286_v20 = vld [vmem:[#allocation5 + $0x194] sm:$0xf0]  ;;  %v926_v23 = vor.u32 %v1254_v18, %v925_v17  ;;  %v1031_v25 = vld [vmem:[#allocation5 + $0x170] sm:$0xf0] }
  0x32   :  { %711 = vmatpush.bf16.msrb.mxu0 %v1098_v40  ;;  %677 = vmatmul.bf16.vlgmr.msra.gmra.mxu1 %v1485_v5  ;;  %v1311_v26 = vld [vmem:[#allocation5 + $0x264] sm:$0xf]  ;;  %v1054_v27 = vor.u32 %v1286_v20, %v1053_v19  ;;  %v1159_v28 = vld [vmem:[#allocation5 + $0x270] sm:$0xf0]  ;;  %v909_v29 = vld [vmem:[#allocation5 + $0x68] sm:$0xf]  ;;  %v1034_v33 = vor.u32 %v1279_v24, %v1031_v25 }
  0x33   :  { %725 = vmatpush.bf16.msrb.mxu1 %v1226_v42  ;;  %705 = vmatmul.bf16.vlgmr.msra.gmra.mxu3 %v1482_v58  ;;  %v1250_v30 = vld [vmem:[#allocation5 + $0x74] sm:$0xf0]  ;;  %v1037_v31 = vld [vmem:[#allocation5 + $0x168] sm:$0xf]  ;;  %v1162_v34 = vor.u32 %v1311_v26, %v1159_v28  ;;  %v1275_v36 = vld [vmem:[#allocation5 + $0x144] sm:$0xf] }
  0x34   :  { %739 = vmatpush.bf16.msrb.mxu2 %v974_v43  ;;  %753 = vmatpush.bf16.msrb.mxu3 %v1102_v47  ;;  %v1282_v32 = vld [vmem:[#allocation5 + $0x174] sm:$0xf0]  ;;  %v910_v35 = vor.u32 %v1250_v30, %v909_v29  ;;  %v1015_v37 = vld [vmem:[#allocation5 + $0x150] sm:$0xf0]  ;;  %v1307_v38 = vld [vmem:[#allocation5 + $0x244] sm:$0xf] }
  0x35   :  { %691 = vmatmul.bf16.vlgmr.msra.gmra.mxu2 %v1488_v9  ;;  %v1038_v39 = vor.u32 %v1282_v32, %v1037_v31  ;;  %v1143_v40 = vld [vmem:[#allocation5 + $0x250] sm:$0xf0]  ;;  %v893_v41 = vld [vmem:[#allocation5 + $0x48] sm:$0xf]  ;;  %v1246_v42 = vld [vmem:[#allocation5 + $0x54] sm:$0xf0]  ;;  %v1018_v45 = vor.u32 %v1275_v36, %v1015_v37 }
  0x36   :  { %712 = vmatpush.bf16.msrb.mxu0 %v1082_v54  ;;  %v1021_v43 = vld [vmem:[#allocation5 + $0x148] sm:$0xf]  ;;  %v1278_v44 = vld [vmem:[#allocation5 + $0x154] sm:$0xf0]  ;;  %v1146_v46 = vor.u32 %v1307_v38, %v1143_v40  ;;  %v894_v47 = vor.u32 %v1246_v42, %v893_v41  ;;  %v1271_v48 = vld [vmem:[#allocation5 + $0x124] sm:$0xf] }
  0x37   :  { %726 = vmatpush.bf16.msrb.mxu1 %v1210_v59  ;;  %v999_v49 = vld [vmem:[#allocation5 + $0x130] sm:$0xf0]  ;;  %v1303_v50 = vld [vmem:[#allocation5 + $0x224] sm:$0xf]  ;;  %v1022_v51 = vor.u32 %v1278_v44, %v1021_v43  ;;  %v877_v53 = vld [vmem:[#allocation5 + $0x28] sm:$0xf] }
  0x38   :  { %740 = vmatpush.bf16.msrb.mxu2 %v958_v60  ;;  %754 = vmatpush.bf16.msrb.mxu3 %v1086_v0  ;;  %v1127_v52 = vld [vmem:[#allocation5 + $0x230] sm:$0xf0]  ;;  %v1242_v54 = vld [vmem:[#allocation5 + $0x34] sm:$0xf0]  ;;  %v1005_v55 = vld [vmem:[#allocation5 + $0x128] sm:$0xf]  ;;  %v1002_v57 = vor.u32 %v1271_v48, %v999_v49 }
  0x39   :  { %v1274_v56 = vld [vmem:[#allocation5 + $0x134] sm:$0xf0]  ;;  %v1267_v59 = vld [vmem:[#allocation5 + $0x104] sm:$0xf]  ;;  %v983_v60 = vld [vmem:[#allocation5 + $0x110] sm:$0xf0]  ;;  %v1130_v61 = vor.u32 %v1303_v50, %v1127_v52  ;;  %v878_v62 = vor.u32 %v1242_v54, %v877_v53 }
  0x3a   :  { %713 = vmatpush.bf16.msrb.mxu0 %v1066_v8  ;;  %v1299_v63 = vld [vmem:[#allocation5 + $0x204] sm:$0xf]  ;;  %v1111_v0 = vld [vmem:[#allocation5 + $0x210] sm:$0xf0]  ;;  %v861_v1 = vld [vmem:[#allocation5 + $0x8] sm:$0xf]  ;;  %v1006_v2 = vor.u32 %v1274_v56, %v1005_v55 }
  0x3b   :  { %727 = vmatpush.bf16.msrb.mxu1 %v1194_v10  ;;  %v1238_v3 = vld [vmem:[#allocation5 + $0x14] sm:$0xf0]  ;;  %v989_v4 = vld [vmem:[#allocation5 + $0x108] sm:$0xf]  ;;  %v1264_v10 = vld [vmem:[#allocation5 + $0xec] sm:$0xf] }
  0x3c   :  { %741 = vmatpush.bf16.msrb.mxu2 %v942_v11  ;;  %755 = vmatpush.bf16.msrb.mxu3 %v1070_v15  ;;  %v1270_v6 = vld [vmem:[#allocation5 + $0x114] sm:$0xf0]  ;;  %v1229_v7 = vld [vmem:[#allocation5 + $0x2e8] sm:$0xf]  ;;  %v986_v11 = vor.u32 %v1267_v59, %v983_v60  ;;  %v975_v12 = vld [vmem:[#allocation5 + $0xf8] sm:$0xf0]  ;;  %v1114_v15 = vor.u32 %v1299_v63, %v1111_v0  ;;  %v862_v16 = vor.u32 %v1238_v3, %v861_v1 }
  0x3d   :  { %v1330_v8 = vld [vmem:[#allocation5 + $0x2f4] sm:$0xf0]  ;;  %v1296_v13 = vld [vmem:[#allocation5 + $0x1ec] sm:$0xf]  ;;  %v1103_v14 = vld [vmem:[#allocation5 + $0x1f8] sm:$0xf0]  ;;  %v990_v19 = vor.u32 %v1270_v6, %v989_v4 }
  0x3e   :  { %714 = vmatpush.bf16.msrb.mxu0 %v1050_v21  ;;  %v1328_v17 = vld [vmem:[#allocation5 + $0x2ec] sm:$0xf]  ;;  %v1231_v18 = vld [vmem:[#allocation5 + $0x2f8] sm:$0xf0]  ;;  %v1230_v20 = vor.u32 %v1330_v8, %v1229_v7  ;;  %v978_v21 = vor.u32 %v1264_v10, %v975_v12  ;;  %v1326_v24 = vld [vmem:[#allocation5 + $0x2d4] sm:$0xf0] }
  0x3f   :  { %728 = vmatpush.bf16.msrb.mxu1 %v1178_v22  ;;  %v1106_v22 = vor.u32 %v1296_v13, %v1103_v14  ;;  %v1260_v25 = vld [vmem:[#allocation5 + $0xcc] sm:$0xf]  ;;  %v1234_v26 = vor.u32 %v1328_v17, %v1231_v18  ;;  %v1087_v29 = vld [vmem:[#allocation5 + $0x1d8] sm:$0xf0]  ;;  %v1322_v36 = vld [vmem:[#allocation5 + $0x2b4] sm:$0xf0] }
  0x40   :  { %742 = vmatpush.bf16.msrb.mxu2 %v926_v23  ;;  %756 = vmatpush.bf16.msrb.mxu3 %v1054_v27  ;;  %v1213_v23 = vld [vmem:[#allocation5 + $0x2c8] sm:$0xf]  ;;  %v959_v27 = vld [vmem:[#allocation5 + $0xd8] sm:$0xf0]  ;;  %v1292_v28 = vld [vmem:[#allocation5 + $0x1cc] sm:$0xf] }
  0x41   :  { %v1324_v30 = vld [vmem:[#allocation5 + $0x2cc] sm:$0xf]  ;;  %v1215_v31 = vld [vmem:[#allocation5 + $0x2d8] sm:$0xf0]  ;;  %v1214_v32 = vor.u32 %v1326_v24, %v1213_v23  ;;  %v1318_v48 = vld [vmem:[#allocation5 + $0x294] sm:$0xf0] }
  0x42   :  { %715 = vmatpush.bf16.msrb.mxu0 %v1034_v33  ;;  %v962_v33 = vor.u32 %v1260_v25, %v959_v27  ;;  %v1256_v37 = vld [vmem:[#allocation5 + $0xac] sm:$0xf]  ;;  %v1218_v38 = vor.u32 %v1324_v30, %v1215_v31  ;;  %v1071_v41 = vld [vmem:[#allocation5 + $0x1b8] sm:$0xf0]  ;;  %v1165_v60 = vld [vmem:[#allocation5 + $0x268] sm:$0xf] }
  0x43   :  { %729 = vmatpush.bf16.msrb.mxu1 %v1162_v34  ;;  %v1090_v34 = vor.u32 %v1292_v28, %v1087_v29  ;;  %v1288_v40 = vld [vmem:[#allocation5 + $0x1ac] sm:$0xf]  ;;  %v1199_v43 = vld [vmem:[#allocation5 + $0x2b8] sm:$0xf0]  ;;  %v1149_v10 = vld [vmem:[#allocation5 + $0x248] sm:$0xf] }
  0x44   :  { %743 = vmatpush.bf16.msrb.mxu2 %v910_v35  ;;  %757 = vmatpush.bf16.msrb.mxu3 %v1038_v39  ;;  %v1197_v35 = vld [vmem:[#allocation5 + $0x2a8] sm:$0xf]  ;;  %v943_v39 = vld [vmem:[#allocation5 + $0xb8] sm:$0xf0]  ;;  %v1320_v42 = vld [vmem:[#allocation5 + $0x2ac] sm:$0xf] }
  0x45   :  { %v1198_v44 = vor.u32 %v1322_v36, %v1197_v35  ;;  %v1252_v49 = vld [vmem:[#allocation5 + $0x8c] sm:$0xf]  ;;  %v1202_v50 = vor.u32 %v1320_v42, %v1199_v43  ;;  %v1055_v53 = vld [vmem:[#allocation5 + $0x198] sm:$0xf0]  ;;  %v1306_v23 = vld [vmem:[#allocation5 + $0x234] sm:$0xf0] }
  0x46   :  { %716 = vmatpush.bf16.msrb.mxu0 %v1018_v45  ;;  %v946_v45 = vor.u32 %v1256_v37, %v943_v39  ;;  %v1284_v52 = vld [vmem:[#allocation5 + $0x18c] sm:$0xf]  ;;  %v1183_v55 = vld [vmem:[#allocation5 + $0x298] sm:$0xf0]  ;;  %v1302_v35 = vld [vmem:[#allocation5 + $0x214] sm:$0xf0] }
  0x47   :  { %730 = vmatpush.bf16.msrb.mxu1 %v1146_v46  ;;  %v1074_v46 = vor.u32 %v1288_v40, %v1071_v41  ;;  %v1316_v54 = vld [vmem:[#allocation5 + $0x28c] sm:$0xf]  ;;  %v1058_v59 = vor.u32 %v1284_v52, %v1055_v53  ;;  %v911_v0 = vld [vmem:[#allocation5 + $0x78] sm:$0xf0] }
  0x48   :  { %744 = vmatpush.bf16.msrb.mxu2 %v894_v47  ;;  %758 = vmatpush.bf16.msrb.mxu3 %v1022_v51  ;;  %v1181_v47 = vld [vmem:[#allocation5 + $0x288] sm:$0xf]  ;;  %v927_v51 = vld [vmem:[#allocation5 + $0x98] sm:$0xf0]  ;;  %v1186_v63 = vor.u32 %v1316_v54, %v1183_v55  ;;  %v1280_v1 = vld [vmem:[#allocation5 + $0x16c] sm:$0xf] }
  0x49   :  { %v1182_v56 = vor.u32 %v1318_v48, %v1181_v47  ;;  %v1312_v3 = vld [vmem:[#allocation5 + $0x26c] sm:$0xf]  ;;  %v1167_v4 = vld [vmem:[#allocation5 + $0x278] sm:$0xf0]  ;;  %v165_v47 = vld [vmem:[#allocation7] sm:$0xf] }
  0x4a   :  { %717 = vmatpush.bf16.msrb.mxu0 %v1002_v57  ;;  %v930_v57 = vor.u32 %v1252_v49, %v927_v51  ;;  %v1244_v12 = vld [vmem:[#allocation5 + $0x4c] sm:$0xf]  ;;  %v1170_v13 = vor.u32 %v1312_v3, %v1167_v4  ;;  %v895_v14 = vld [vmem:[#allocation5 + $0x58] sm:$0xf0]  ;;  %v167_v48 = vperm.slane %v165_v47, 0 }
  0x4b   :  { %731 = vmatpush.bf16.msrb.mxu1 %v1130_v61  ;;  %v1314_v61 = vld [vmem:[#allocation5 + $0x274] sm:$0xf0]  ;;  %v1308_v17 = vld [vmem:[#allocation5 + $0x24c] sm:$0xf]  ;;  %v1151_v18 = vld [vmem:[#allocation5 + $0x258] sm:$0xf0] }
  0x4c   :  { %745 = vmatpush.bf16.msrb.mxu2 %v878_v62  ;;  %759 = vmatpush.bf16.msrb.mxu3 %v1006_v2  ;;  %v1248_v62 = vld [vmem:[#allocation5 + $0x6c] sm:$0xf]  ;;  %v1039_v2 = vld [vmem:[#allocation5 + $0x178] sm:$0xf0]  ;;  %v1166_v6 = vor.u32 %v1314_v61, %v1165_v60  ;;  %v1154_v25 = vor.u32 %v1308_v17, %v1151_v18  ;;  %v170_v18 = vperm.slane %v165_v47, 3 }
  0x4d   :  { %v914_v7 = vor.u32 %v1248_v62, %v911_v0  ;;  %v1042_v8 = vor.u32 %v1280_v1, %v1039_v2  ;;  %v1240_v24 = vld [vmem:[#allocation5 + $0x2c] sm:$0xf]  ;;  %v1007_v28 = vld [vmem:[#allocation5 + $0x138] sm:$0xf0] }
  0x4e   :  { %718 = vmatpush.bf16.msrb.mxu0 %v986_v11  ;;  %v1310_v11 = vld [vmem:[#allocation5 + $0x254] sm:$0xf0]  ;;  %v1272_v27 = vld [vmem:[#allocation5 + $0x12c] sm:$0xf]  ;;  %v1135_v30 = vld [vmem:[#allocation5 + $0x238] sm:$0xf0] }
  0x4f   :  { %732 = vmatpush.bf16.msrb.mxu1 %v1114_v15  ;;  %v1276_v15 = vld [vmem:[#allocation5 + $0x14c] sm:$0xf]  ;;  %v991_v40 = vld [vmem:[#allocation5 + $0x118] sm:$0xf0] }
  0x50   :  { %746 = vmatpush.bf16.msrb.mxu2 %v862_v16  ;;  %760 = vmatpush.bf16.msrb.mxu3 %v990_v19  ;;  %v1023_v16 = vld [vmem:[#allocation5 + $0x158] sm:$0xf0]  ;;  %v1150_v19 = vor.u32 %v1310_v11, %v1149_v10  ;;  %v1304_v29 = vld [vmem:[#allocation5 + $0x22c] sm:$0xf] }
  0x51   :  { %719 = vmatmul.bf16.vlgmr.msrb.gmra.mxu0 %v1485_v5  ;;  %v1236_v36 = vld [vmem:[#allocation5 + $0xc] sm:$0xf]  ;;  %v1138_v37 = vor.u32 %v1304_v29, %v1135_v30  ;;  %v1119_v42 = vld [vmem:[#allocation5 + $0x218] sm:$0xf0] }
  0x52   :  { %767 = vmatpush.bf16.msra.mxu0 %v1230_v20  ;;  %733 = vmatmul.bf16.vlgmr.msrb.gmra.mxu1 %v1488_v9  ;;  %v898_v20 = vor.u32 %v1244_v12, %v895_v14  ;;  %v1268_v39 = vld [vmem:[#allocation5 + $0x10c] sm:$0xf]  ;;  %v169_v12 = vperm.slane %v165_v47, 2 }
  0x53   :  { %781 = vmatpush.bf16.msra.mxu1 %v978_v21  ;;  %747 = vmatmul.bf16.vlgmr.msrb.gmra.mxu2 %v1482_v58  ;;  %v1026_v21 = vor.u32 %v1276_v15, %v1023_v16  ;;  %v1300_v41 = vld [vmem:[#allocation5 + $0x20c] sm:$0xf] }
  0x54   :  { %795 = vmatpush.bf16.msra.mxu2 %v1106_v22  ;;  %809 = vmatpush.bf16.msra.mxu3 %v1234_v26  ;;  %v1133_v22 = vld [vmem:[#allocation5 + $0x228] sm:$0xf]  ;;  %v879_v26 = vld [vmem:[#allocation5 + $0x38] sm:$0xf0] }
  0x55   :  { %761 = vmatmul.bf16.vlgmr.msrb.gmra.mxu3 %v1485_v5  ;;  %v1134_v31 = vor.u32 %v1306_v23, %v1133_v22 }
  0x56   :  { %768 = vmatpush.bf16.msra.mxu0 %v1214_v32  ;;  %v882_v32 = vor.u32 %v1240_v24, %v879_v26 }
  0x57   :  { %782 = vmatpush.bf16.msra.mxu1 %v962_v33  ;;  %v1010_v33 = vor.u32 %v1272_v27, %v1007_v28 }
  0x58   :  { %796 = vmatpush.bf16.msra.mxu2 %v1090_v34  ;;  %810 = vmatpush.bf16.msra.mxu3 %v1218_v38  ;;  %v1117_v34 = vld [vmem:[#allocation5 + $0x208] sm:$0xf]  ;;  %v863_v38 = vld [vmem:[#allocation5 + $0x18] sm:$0xf0] }
  0x59   :  { %v1118_v43 = vor.u32 %v1302_v35, %v1117_v34 }
  0x5a   :  { %769 = vmatpush.bf16.msra.mxu0 %v1198_v44  ;;  %v866_v44 = vor.u32 %v1236_v36, %v863_v38 }
  0x5b   :  { %783 = vmatpush.bf16.msra.mxu1 %v946_v45  ;;  %v994_v45 = vor.u32 %v1268_v39, %v991_v40 }
  0x5c   :  { %797 = vmatpush.bf16.msra.mxu2 %v1074_v46  ;;  %811 = vmatpush.bf16.msra.mxu3 %v1202_v50  ;;  %v1122_v46 = vor.u32 %v1300_v41, %v1119_v42 }
  0x5e   :  { %770 = vmatpush.bf16.msra.mxu0 %v1182_v56 }
  0x5f   :  { %784 = vmatpush.bf16.msra.mxu1 %v930_v57 }
  0x60   :  { %798 = vmatpush.bf16.msra.mxu2 %v1058_v59  ;;  %812 = vmatpush.bf16.msra.mxu3 %v1186_v63 }
  0x62   :  { %771 = vmatpush.bf16.msra.mxu0 %v1166_v6 }
  0x63   :  { %785 = vmatpush.bf16.msra.mxu1 %v914_v7 }
  0x64   :  { %799 = vmatpush.bf16.msra.mxu2 %v1042_v8  ;;  %813 = vmatpush.bf16.msra.mxu3 %v1170_v13 }
  0x66   :  { %772 = vmatpush.bf16.msra.mxu0 %v1150_v19 }
  0x67   :  { %786 = vmatpush.bf16.msra.mxu1 %v898_v20 }
  0x68   :  { %800 = vmatpush.bf16.msra.mxu2 %v1026_v21  ;;  %814 = vmatpush.bf16.msra.mxu3 %v1154_v25 }
  0x6a   :  { %773 = vmatpush.bf16.msra.mxu0 %v1134_v31 }
  0x6b   :  { %787 = vmatpush.bf16.msra.mxu1 %v882_v32 }
  0x6c   :  { %801 = vmatpush.bf16.msra.mxu2 %v1010_v33  ;;  %815 = vmatpush.bf16.msra.mxu3 %v1138_v37 }
  0x6e   :  { %774 = vmatpush.bf16.msra.mxu0 %v1118_v43 }
  0x6f   :  { %788 = vmatpush.bf16.msra.mxu1 %v866_v44 }
  0x70   :  { %802 = vmatpush.bf16.msra.mxu2 %v994_v45  ;;  %816 = vmatpush.bf16.msra.mxu3 %v1122_v46 }
  0x71   :  { %775 = vmatmul.bf16.vlgmr.msra.gmra.mxu0 %v1488_v9 }
  0x72   :  { %789 = vmatmul.bf16.vlgmr.msra.gmra.mxu1 %v1482_v58 }
  0x73   :  { %803 = vmatmul.bf16.vlgmr.msra.gmra.mxu2 %v1485_v5  ;;  %817 = vmatmul.bf16.vlgmr.msra.gmra.mxu3 %v1488_v9  ;;  %v168_v5 = vperm.slane %v165_v47, 1 }
  0xae   :  { %v664_v49 = vpop.f32.mrf.mxu0 }
  0xaf   :  { %v665_v50 = vadd.f32 %v664_v49, %v167_v48  ;;  %v678_v51 = vpop.f32.mrf.mxu1 }
  0xb1   :  { %v679_v52 = vadd.f32 %v678_v51, %v665_v50 }
  0xb6   :  { %v666_v53 = vpop.f32.mrf.mxu0  ;;  %v706_v58 = vpop.f32.mrf.mxu3 }
  0xb7   :  { %v667_v55 = vadd.f32 %v666_v53, %v167_v48  ;;  %v680_v57 = vpop.f32.mrf.mxu1  ;;  %v707_v62 = vadd.f32 %v706_v58, %v168_v5 }
  0xb8   :  { %v692_v54 = vpop.f32.mrf.mxu2 }
  0xb9   :  { %v693_v56 = vadd.f32 %v692_v54, %v679_v52  ;;  %v681_v59 = vadd.f32 %v680_v57, %v667_v55 }
  0xbb   :  { %823 = vst [vmem:[#allocation8] sm:$0xff] %v693_v56 }
  0xbe   :  { %v708_v1 = vpop.f32.mrf.mxu3 }
  0xbf   :  { %v709_v3 = vadd.f32 %v708_v1, %v168_v5 }
  0xc0   :  { %v694_v60 = vpop.f32.mrf.mxu2 }
  0xc1   :  { %v695_v61 = vadd.f32 %v694_v60, %v681_v59 }
  0xc3   :  { %827 = vst [vmem:[#allocation8 + $0x20] sm:$0xff] %v695_v61 }
  0xce   :  { %v720_v9 = vpop.f32.mrf.mxu0 }
  0xcf   :  { %v721_v63 = vadd.f32 %v720_v9, %v707_v62  ;;  %v734_v0 = vpop.f32.mrf.mxu1 }
  0xd1   :  { %v735_v2 = vadd.f32 %v734_v0, %v721_v63 }
  0xd3   :  { %824 = vst [vmem:[#allocation8 + $0x8] sm:$0xff] %v735_v2 }
  0xd6   :  { %v722_v4 = vpop.f32.mrf.mxu0  ;;  %v748_v10 = vpop.f32.mrf.mxu2 }
  0xd7   :  { %v723_v6 = vadd.f32 %v722_v4, %v709_v3  ;;  %v736_v7 = vpop.f32.mrf.mxu1  ;;  %v749_v13 = vadd.f32 %v748_v10, %v169_v12 }
  0xd8   :  { %v762_v11 = vpop.f32.mrf.mxu3 }
  0xd9   :  { %v737_v8 = vadd.f32 %v736_v7, %v723_v6  ;;  %v763_v14 = vadd.f32 %v762_v11, %v749_v13 }
  0xdb   :  { %828 = vst [vmem:[#allocation8 + $0x28] sm:$0xff] %v737_v8 }
  0xde   :  { %v750_v15 = vpop.f32.mrf.mxu2 }
  0xdf   :  { %v751_v21 = vadd.f32 %v750_v15, %v169_v12 }
  0xe0   :  { %v764_v16 = vpop.f32.mrf.mxu3 }
  0xe1   :  { %v765_v23 = vadd.f32 %v764_v16, %v751_v21 }
  0xee   :  { %v776_v17 = vpop.f32.mrf.mxu0 }
  0xef   :  { %v777_v19 = vadd.f32 %v776_v17, %v763_v14  ;;  %v790_v20 = vpop.f32.mrf.mxu1 }
  0xf0   :  { %v791_v22 = vadd.f32 %v790_v20, %v170_v18 }
  0xf1   :  { %825 = vst [vmem:[#allocation8 + $0x10] sm:$0xff] %v777_v19 }
  0xf6   :  { %v804_v24 = vpop.f32.mrf.mxu2  ;;  %v818_v26 = vpop.f32.mrf.mxu3 }
  0xf7   :  { %v805_v25 = vadd.f32 %v804_v24, %v791_v22  ;;  %v778_v27 = vpop.f32.mrf.mxu0  ;;  %v792_v30 = vpop.f32.mrf.mxu1 }
  0xf8   :  { %v779_v28 = vadd.f32 %v778_v27, %v765_v23  ;;  %v793_v31 = vadd.f32 %v792_v30, %v170_v18 }
  0xf9   :  { %v819_v29 = vadd.f32 %v818_v26, %v805_v25 }
  0xfa   :  { %829 = vst [vmem:[#allocation8 + $0x30] sm:$0xff] %v779_v28 }
  0xfb   :  { %826 = vst [vmem:[#allocation8 + $0x18] sm:$0xff] %v819_v29 }
  0xfe   :  { %v806_v32 = vpop.f32.mrf.mxu2  ;;  %v820_v34 = vpop.f32.mrf.mxu3 }
  0xff   :  { %v807_v33 = vadd.f32 %v806_v32, %v793_v31 }
 0x101   :  { %v821_v35 = vadd.f32 %v820_v34, %v807_v33 }
 0x103   :  { %830 = vst [vmem:[#allocation8 + $0x38] sm:$0xff] %v821_v35 }
 0x104   :  { %843 = dma.vmem_to_hbm [thread:$0]  %s836_s2, 1024, %s838_s5, [#allocation4], %s1451_s6, %s1451_s6, %s1452_s7  }
 0x105   :  { %1441 = dma.done.wait [#allocation4], 1024  }
 0x106   :  { %1442 = vsyncadd [#allocation4], 4294966272 }
 0x107   :  { %848 = vsyncpa [#allocation3], 1 }
 0x108   :  { %849 = vsyncpa [#allocation6], 1 }
 0x109   :  { %850 = vsyncpa [#allocation4], 1 }

</bundles_post_ra>
